<compile_context>
chip_gen: v7x
topology: tpu7x:2x2x1
jax: 0.10.0
libtpu: 0.0.40
codegen_flags: <defaults>
</compile_context>

<pallas_src>
import functools

import jax
import jax.numpy as jnp
from jax.experimental import pallas as pl
from jax.experimental.pallas import tpu as pltpu

_TILE_B_MAX = 8192  # lanes per batch tile; multiple of 128 (perf review item 1)


def _lyapunov_critic_kernel(x_ref, w1_ref, b1_ref, w2_ref, b2_ref,
                            w3_ref, b3_ref, o_ref, *, act_dtype):
    """Fused 3-layer MLP, batch on lanes.

    x_ref : (input_size, TILE_B)   VMEM (streamed per grid step)
    w1_ref: (H1, input_size)       VMEM (resident)
    b1_ref: (H1, 1)                VMEM (resident)
    w2_ref: (H2, H1)               VMEM (resident)
    b2_ref: (H2, 1)                VMEM (resident)
    w3_ref: (1, H2)                VMEM (resident)
    b3_ref: (1,)                   SMEM scalar
    o_ref : (1, TILE_B)            VMEM (lane-dense output)
    """
    x = x_ref[...]                                                   # (D, T)

    z1 = jnp.dot(w1_ref[...], x,
                 preferred_element_type=jnp.float32) + b1_ref[...]   # (H1, T)
    h1 = jnp.tanh(z1.astype(act_dtype)).astype(jnp.float32)

    z2 = jnp.dot(w2_ref[...], h1,
                 preferred_element_type=jnp.float32) + b2_ref[...]   # (H2, T)
    h2 = jnp.tanh(z2.astype(act_dtype)).astype(jnp.float32)

    z3 = jnp.dot(w3_ref[...], h2,
                 preferred_element_type=jnp.float32) + b3_ref[0]     # (1, T)
    o_ref[...] = jax.nn.sigmoid(z3)


def _batch_dim_semantics(num_tiles):
    """CORE_PARALLEL on v7-class chips (2 TCs) with a balanced grid, else parallel."""
    kind = ""
    try:
        kind = jax.devices()[0].device_kind.lower()
    except Exception:
        pass
    if "v7" in kind and num_tiles >= 2 and num_tiles % 2 == 0:
        return (pltpu.CORE_PARALLEL,)
    return ("parallel",)


def _forward_impl(x_t, params, use_bf16_activations):
    """x_t: (input_size, B) f32 -> (B,) f32."""
    w1, b1, w2, b2, w3, b3 = params
    in_size, batch = x_t.shape

    # Full-batch block when it fits (block == full array dim, always legal);
    # otherwise 8192-lane tiles with a ragged (masked) final block.
    tile_b = batch if batch <= _TILE_B_MAX else _TILE_B_MAX
    num_tiles = pl.cdiv(batch, tile_b)

    act_dtype = jnp.bfloat16 if use_bf16_activations else jnp.float32
    kernel = functools.partial(_lyapunov_critic_kernel, act_dtype=act_dtype)

    out = pl.pallas_call(
        kernel,
        out_shape=jax.ShapeDtypeStruct((1, batch), jnp.float32),
        grid=(num_tiles,),
        in_specs=[
            # x tile marches along the batch (lane) axis.
            pl.BlockSpec((in_size, tile_b), lambda i: (0, i)),
            # Weights/biases: constant block index -> stay resident in VMEM.
            pl.BlockSpec(w1.shape, lambda i: (0, 0)),
            pl.BlockSpec(b1.shape, lambda i: (0, 0)),
            pl.BlockSpec(w2.shape, lambda i: (0, 0)),
            pl.BlockSpec(b2.shape, lambda i: (0, 0)),
            pl.BlockSpec(w3.shape, lambda i: (0, 0)),
            # Scalar output bias lives in SMEM.
            pl.BlockSpec(memory_space=pltpu.MemorySpace.SMEM),
        ],
        out_specs=pl.BlockSpec((1, tile_b), lambda i: (0, i)),
        compiler_params=pltpu.CompilerParams(
            dimension_semantics=_batch_dim_semantics(num_tiles)),
    )(x_t, w1, b1, w2, b2, w3, b3)

    return out[0]  # (B,), equivalent to .squeeze(-1)


@functools.partial(jax.jit, static_argnames=("use_bf16_activations",))
def lyapunov_critic_forward_t(x_t, params, use_bf16_activations=False):
    """Preferred entry point: x_t already in (input_size, B) layout (no extra
    HBM transpose pass)."""
    return _forward_impl(x_t, params, use_bf16_activations)


@functools.partial(jax.jit, static_argnames=("use_bf16_activations",))
def lyapunov_critic_forward(x, params, use_bf16_activations=False):
    """PyTorch-layout entry point: x is (B, input_size).  The single x.T is
    layout plumbing; producers that can emit (input_size, B) should call
    lyapunov_critic_forward_t and avoid it."""
    return _forward_impl(x.T, params, use_bf16_activations)


def init_params(key, input_size, hidden_sizes=(20, 20)):
    """PyTorch-Linear-style init, weights kept in (out_features, in_features)."""
    sizes = (input_size,) + tuple(hidden_sizes) + (1,)
    params = []
    for i in range(len(sizes) - 1):
        fan_in, fan_out = sizes[i], sizes[i + 1]
        key, kw, kb = jax.random.split(key, 3)
        bound = 1.0 / jnp.sqrt(jnp.float32(fan_in))
        w = jax.random.uniform(kw, (fan_out, fan_in), jnp.float32, -bound, bound)
        if fan_out == 1:
            b = jax.random.uniform(kb, (1,), jnp.float32, -bound, bound)
        else:
            b = jax.random.uniform(kb, (fan_out, 1), jnp.float32, -bound, bound)
        params += [w, b]
    return tuple(params)


def _reference_forward(x, params):
    w1, b1, w2, b2, w3, b3 = params
    h1 = jnp.tanh(x @ w1.T + b1[:, 0])
    h2 = jnp.tanh(h1 @ w2.T + b2[:, 0])
    return jax.nn.sigmoid(h2 @ w3.T + b3)[:, 0]


# TODO(synk): forward_with_grad (autograd w.r.t. inputs) and forward_dreal
# (symbolic dReal export) are host-side APIs of the PyTorch module, not part
# of the forward kernel; use jax.grad on lyapunov_critic_forward if needed.


if __name__ == "__main__":
    key = jax.random.PRNGKey(0)
    kx, kp = jax.random.split(key)

    batch, input_size = 8, 4
    x = jax.random.normal(kx, (batch, input_size), jnp.float32)
    params = init_params(kp, input_size, hidden_sizes=(20, 20))

    y = lyapunov_critic_forward(x, params)
    y = jax.block_until_ready(y)

    y_ref = _reference_forward(x, params)
    assert y.shape == (batch,), y.shape
    assert jnp.allclose(y, y_ref, atol=1e-5, rtol=1e-5), (y, y_ref)

    print("KERNEL_OK")
</pallas_src>

<mosaic_0001>
module attributes {stable_mosaic.version = 11 : i64} {
  func.func @_lyapunov_critic_kernel(%arg0: i32, %arg1: memref<4x8xf32, #tpu.memory_space<vmem>>, %arg2: memref<20x4xf32, #tpu.memory_space<vmem>>, %arg3: memref<20x1xf32, #tpu.memory_space<vmem>>, %arg4: memref<20x20xf32, #tpu.memory_space<vmem>>, %arg5: memref<20x1xf32, #tpu.memory_space<vmem>>, %arg6: memref<1x20xf32, #tpu.memory_space<vmem>>, %arg7: memref<1xf32, #tpu.memory_space<smem>>, %arg8: memref<1x8xf32, #tpu.memory_space<vmem>>) attributes {dimension_semantics = [#tpu.dimension_semantics<parallel>], iteration_bounds = array<i64: 1>, scalar_prefetch = 0 : i64, scratch_operands = 0 : i64, tpu.core_type = #tpu.core_type<tc>, window_params = [{transform_indices = @transform_0, window_bounds = array<i64: 4, 8>}, {pipeline_mode = #tpu.pipeline_mode<synchronous>, transform_indices = @transform_1, window_bounds = array<i64: 20, 4>}, {pipeline_mode = #tpu.pipeline_mode<synchronous>, transform_indices = @transform_2, window_bounds = array<i64: 20, 1>}, {pipeline_mode = #tpu.pipeline_mode<synchronous>, transform_indices = @transform_3, window_bounds = array<i64: 20, 20>}, {pipeline_mode = #tpu.pipeline_mode<synchronous>, transform_indices = @transform_4, window_bounds = array<i64: 20, 1>}, {pipeline_mode = #tpu.pipeline_mode<synchronous>, transform_indices = @transform_5, window_bounds = array<i64: 1, 20>}, {transform_indices = @transform_6, window_bounds = array<i64: 1>}, {transform_indices = @transform_7, window_bounds = array<i64: 1, 8>}]} {
    %c0 = arith.constant 0 : index
    %c0_0 = arith.constant 0 : index
    %0 = vector.load %arg1[%c0, %c0_0] : memref<4x8xf32, #tpu.memory_space<vmem>>, vector<4x8xf32>
    %c0_1 = arith.constant 0 : index
    %c0_2 = arith.constant 0 : index
    %1 = vector.load %arg2[%c0_1, %c0_2] : memref<20x4xf32, #tpu.memory_space<vmem>>, vector<20x4xf32>
    %cst = arith.constant dense<0.000000e+00> : vector<20x8xf32>
    %2 = tpu.matmul %1, %0, %cst {dimension_numbers = #tpu.dot_dimension_numbers<[1], [0], [0], [1], [0, 0, 1, 1], [], []>} : vector<20x4xf32>, vector<4x8xf32>, vector<20x8xf32> -> vector<20x8xf32>
    %c0_3 = arith.constant 0 : index
    %c0_4 = arith.constant 0 : index
    %3 = vector.load %arg3[%c0_3, %c0_4] : memref<20x1xf32, #tpu.memory_space<vmem>>, vector<20x1xf32>
    %4 = vector.broadcast %3 : vector<20x1xf32> to vector<20x8xf32>
    %5 = arith.addf %2, %4 : vector<20x8xf32>
    %6 = math.tanh %5 : vector<20x8xf32>
    %c0_5 = arith.constant 0 : index
    %c0_6 = arith.constant 0 : index
    %7 = vector.load %arg4[%c0_5, %c0_6] : memref<20x20xf32, #tpu.memory_space<vmem>>, vector<20x20xf32>
    %cst_7 = arith.constant dense<0.000000e+00> : vector<20x8xf32>
    %8 = tpu.matmul %7, %6, %cst_7 {dimension_numbers = #tpu.dot_dimension_numbers<[1], [0], [0], [1], [0, 0, 1, 1], [], []>} : vector<20x20xf32>, vector<20x8xf32>, vector<20x8xf32> -> vector<20x8xf32>
    %c0_8 = arith.constant 0 : index
    %c0_9 = arith.constant 0 : index
    %9 = vector.load %arg5[%c0_8, %c0_9] : memref<20x1xf32, #tpu.memory_space<vmem>>, vector<20x1xf32>
    %10 = vector.broadcast %9 : vector<20x1xf32> to vector<20x8xf32>
    %11 = arith.addf %8, %10 : vector<20x8xf32>
    %12 = math.tanh %11 : vector<20x8xf32>
    %c0_10 = arith.constant 0 : index
    %c0_11 = arith.constant 0 : index
    %13 = vector.load %arg6[%c0_10, %c0_11] : memref<1x20xf32, #tpu.memory_space<vmem>>, vector<1x20xf32>
    %cst_12 = arith.constant dense<0.000000e+00> : vector<1x8xf32>
    %14 = tpu.matmul %13, %12, %cst_12 {dimension_numbers = #tpu.dot_dimension_numbers<[1], [0], [0], [1], [0, 0, 1, 1], [], []>} : vector<1x20xf32>, vector<20x8xf32>, vector<1x8xf32> -> vector<1x8xf32>
    %c0_13 = arith.constant 0 : index
    %15 = memref.load %arg7[%c0_13] : memref<1xf32, #tpu.memory_space<smem>>
    %16 = vector.broadcast %15 : f32 to vector<1x8xf32>
    %17 = arith.addf %14, %16 : vector<1x8xf32>
    %18 = arith.negf %17 : vector<1x8xf32>
    %19 = math.exp %18 : vector<1x8xf32>
    %cst_14 = arith.constant 1.000000e+00 : f32
    %20 = vector.broadcast %cst_14 : f32 to vector<1x8xf32>
    %21 = arith.addf %20, %19 : vector<1x8xf32>
    %22 = arith.divf %20, %21 : vector<1x8xf32>
    %c0_15 = arith.constant 0 : index
    %c0_16 = arith.constant 0 : index
    %23 = vector.load %arg8[%c0_15, %c0_16] : memref<1x8xf32, #tpu.memory_space<vmem>>, vector<1x8xf32>
    tpu.vector_store %arg8[%c0_15, %c0_16], %22 {strides = array<i32>} : memref<1x8xf32, #tpu.memory_space<vmem>>, vector<1x8xf32>,
    return
  }
  func.func @transform_0(%arg0: i32) -> (i32, i32) {
    %c0_i32 = arith.constant 0 : i32
    %c0_i32_0 = arith.constant 0 : i32
    return %c0_i32, %arg0 : i32, i32
  }
  func.func @transform_1(%arg0: i32) -> (i32, i32) {
    %c0_i32 = arith.constant 0 : i32
    %c0_i32_0 = arith.constant 0 : i32
    %c0_i32_1 = arith.constant 0 : i32
    return %c0_i32, %c0_i32_0 : i32, i32
  }
  func.func @transform_2(%arg0: i32) -> (i32, i32) {
    %c0_i32 = arith.constant 0 : i32
    %c0_i32_0 = arith.constant 0 : i32
    %c0_i32_1 = arith.constant 0 : i32
    return %c0_i32, %c0_i32_0 : i32, i32
  }
  func.func @transform_3(%arg0: i32) -> (i32, i32) {
    %c0_i32 = arith.constant 0 : i32
    %c0_i32_0 = arith.constant 0 : i32
    %c0_i32_1 = arith.constant 0 : i32
    return %c0_i32, %c0_i32_0 : i32, i32
  }
  func.func @transform_4(%arg0: i32) -> (i32, i32) {
    %c0_i32 = arith.constant 0 : i32
    %c0_i32_0 = arith.constant 0 : i32
    %c0_i32_1 = arith.constant 0 : i32
    return %c0_i32, %c0_i32_0 : i32, i32
  }
  func.func @transform_5(%arg0: i32) -> (i32, i32) {
    %c0_i32 = arith.constant 0 : i32
    %c0_i32_0 = arith.constant 0 : i32
    %c0_i32_1 = arith.constant 0 : i32
    return %c0_i32, %c0_i32_0 : i32, i32
  }
  func.func @transform_6(%arg0: i32) -> i32 {
    %c0_i32 = arith.constant 0 : i32
    %c0_i32_0 = arith.constant 0 : i32
    return %c0_i32 : i32
  }
  func.func @transform_7(%arg0: i32) -> (i32, i32) {
    %c0_i32 = arith.constant 0 : i32
    %c0_i32_0 = arith.constant 0 : i32
    return %c0_i32, %arg0 : i32, i32
  }
}

</mosaic_0001>

<bundles_post_ra>
// kernel: lyapunov_critic_forward.1
= control target key start
LH: loop header
LB: loop body
LE: loop exit
PB: predicated region body
PF: predicated region fallthrough
CT: control target
= control target key end

     0   :  { %vm60_vm0 = vcmask 1043456   ;;  %v478_v2 = vmov 0.0   ;;  %vm479_vm1 = vmmov 0   ;;  %vm50_vm2 = vcmask 31744   ;;  %s607_s0 = inlined_call_operand.vmem [shape: f32[4,8], index: 0, kind: input, shape index: {}]   ;;  %s608_s1 = inlined_call_operand.vmem [shape: f32[20,4], index: 1, kind: input, shape index: {}]   ;;  %s609_s2 = inlined_call_operand.vmem [shape: f32[20,1], index: 2, kind: input, shape index: {}]   ;;  %s610_s3 = inlined_call_operand.vmem [shape: f32[20,20], index: 3, kind: input, shape index: {}]   ;;  %s611_s4 = inlined_call_operand.vmem [shape: f32[20,1], index: 4, kind: input, shape index: {}]   ;;  %s612_s5 = inlined_call_operand.vmem [shape: f32[1,20], index: 5, kind: input, shape index: {}]   ;;  %s613_s6 = inlined_call_operand.<no memory space> [shape: f32[1], index: 6, kind: input, shape index: {}]   ;;  %s614_s7 = inlined_call_operand.hbm [shape: f32[1,8], index: 7, kind: output, shape index: {}]  }
   0x1   :  { %v28_v0 = vld [vmem:[%s607_s0] sm:$0xf]  ;;  %390 = vmatprep.subr.mxu0 %v478_v2  ;;  %392 = vmatprep.mubr.msk.f32.mxu0 %vm479_vm1, %v478_v2  ;;  %v480_v4 = vmov 0   ;;  %v34_v5 = vld [vmem:[%s609_s2 + $0x10] sm:$0xf] }
   0x2   :  { %v29_v1 = vld [vmem:[%s608_s1] sm:$0xff]  ;;  %391 = vmatpush3.msk.msra.mxu0 %vm60_vm0, %v28_v0  ;;  %436 = vset.pattern.permute.xlu0 %v480_v4 }
   0x3   :  { %v32_v3 = vld [vmem:[%s609_s2] sm:$0xff]  ;;  %393 = vmatmul.mubr.msk.f32.vlgmr.msra.gmra.mrb[0].mxu0 %vm50_vm2, %v29_v1 }
   0x4   :  { %37 = vperm.xlu0 %436, %v32_v3  }
   0x5   :  { %13 = vsyncpa [#allocation4], 0  ;;  %395 = vmatprep.mubr.msk.f32.mxu0 %vm479_vm1, %v478_v2  ;;  %v30_v6 = vld [vmem:[%s608_s1 + $0x8] sm:$0xff]  ;;  %437 = vset.pattern.permute.xlu1 %v480_v4  ;;  %v150_v8 = vld [vmem:[%s611_s4] sm:$0xff]  ;;  %v481_v12 = vmov 0.0|0.0   ;;  %vm168_vm3 = vcmask 162816   ;;  %v266_v49 = vstv %s613_s6 }
   0x6   :  { %v33_v7 = vld [vmem:[%s609_s2 + $0x8] sm:$0xff]  ;;  %47 = vperm.xlu1 %437, %v34_v5   ;;  %407 = vmatprep.mubr.msk.f32.mxu1 %vm479_vm1, %v478_v2  ;;  %v31_v9 = vld [vmem:[%s608_s1 + $0x10] sm:$0xf]  ;;  %v147_v29 = vld [vmem:[%s610_s3] sm:$0xff]  ;;  %s482_s26 = smov [#allocation3]   ;;  %vm349_vm4 = vcmask 57344  }
   0x7   :  { %396 = vmatmul.mubr.msk.f32.gmra.mrb[2].mxu0 %vm50_vm2, %v30_v6  ;;  %v151_v10 = vld [vmem:[%s611_s4 + $0x8] sm:$0xff]  ;;  %v152_v11 = vld [vmem:[%s611_s4 + $0x10] sm:$0xf]  ;;  %425 = vmatprep.subr.bf16.mxu1 %v481_v12  ;;  %v264_v47 = vld [vmem:[%s612_s5] sm:$0x1]  ;;  %s357_s27 = sshll.u32 %s482_s26, 4  ;;  %s358_s27 = int_to_ptr.vmem [resolvable:$true] %s357_s27 }
   0x8   :  { %42 = vperm.xlu0 %436, %v33_v7   ;;  %398 = vmatprep.mubr.msk.f32.mxu0 %vm479_vm1, %v478_v2  ;;  %v148_v30 = vld [vmem:[%s610_s3 + $0x8] sm:$0xff]  ;;  %v149_v31 = vld [vmem:[%s610_s3 + $0x10] sm:$0xf]  ;;  %s454_s5 = scalar_lea.vmem %s358_s27, 16  ;;  %s458_s28 = scalar_lea.vmem %s358_s27, 32 }
   0x9   :  { %428 = vmatprep.subr.bf16.mxu0 %v481_v12  ;;  %p455_p0 = scmp.ne.s32.totalorder %s358_s27, %s454_s5  ;;  %p459_p1 = scmp.lt.s32.totalorder %s358_s27, %s358_s27 }
   0xa   :  { %155 = vperm.xlu1 %437, %v150_v8   ;;  %p460_p2 = scmp.lt.s32.totalorder %s458_s28, %s454_s5 }
   0xb   :  { %399 = vmatmul.mubr.msk.f32.gmra.mrb[4].mxu0 %vm50_vm2, %v31_v9 }
   0xc   :  { %160 = vperm.xlu0 %436, %v151_v10   ;;  %422 = vmatprep.mubr.msk.f32.mxu0 %vm479_vm1, %v478_v2  ;;  %p461_p3 = por %p460_p2, %p459_p1 }
   0xe   :  { %165 = vperm.xlu1 %437, %v152_v11   ;;  %p462_p4 = pnand %p461_p3, %p455_p0 }
  0x83   :  { %v38_v13 = vpop.permute.xlu0 %37 }
  0x85   :  { %v48_v21 = vpop.permute.xlu1 %47 }
  0x87   :  { %v43_v17 = vpop.permute.xlu0 %42 }
  0x89   :  { %v156_v33 = vpop.permute.xlu1 %155 }
  0x8b   :  { %v161_v36 = vpop.permute.xlu0 %160 }
  0x8d   :  { %v166_v40 = vpop.permute.xlu1 %165 }
  0xd6   :  { %v130_v14 = vpop.f32.mrb[0].mxu0 }
  0xd7   :  { %v394_v15 = vpop.f32.mrb[1].mxu0  ;;  %v131_v16 = vadd.f32 %v130_v14, %v38_v13 }
  0xd9   :  { %438 = vtanh.f32 %v131_v16 }
  0xda   :  { %v135_v18 = vpop.f32.mrb[2].mxu0 }
  0xdb   :  { %v136_v19 = vadd.f32 %v135_v18, %v43_v17  ;;  %v397_v20 = vpop.f32.mrb[3].mxu0 }
  0xdd   :  { %440 = vtanh.f32 %v136_v19 }
  0xde   :  { %v140_v22 = vpop.f32.mrb[4].mxu0 }
  0xdf   :  { %v141_v23 = vadd.f32 %v140_v22, %v48_v21  ;;  %v400_v24 = vpop.f32.mrb[5].mxu0 }
  0xe1   :  { %442 = vtanh.f32 %v141_v23 }
  0xe3   :  { %v439_v25 = vpop.eup %438 }
  0xe7   :  { %v441_v26 = vpop.eup %440 }
  0xe8   :  { %v426_v27 = vpack.c.bf16 %v441_v26, %v439_v25 }
  0xea   :  { %427 = vmatpush3.bf16.msra.mxu1 %v426_v27 }
  0xeb   :  { %v443_v28 = vpop.eup %442  ;;  %405 = vmatprep.subr.mxu1 %v478_v2 }
  0xee   :  { %406 = vmatpush3.msk.msra.mxu1 %vm60_vm0, %v443_v28 }
  0xef   :  { %408 = vmatmul.mubr.msk.f32.vlgmr.msra.gmra.mrb[0].mxu1 %vm168_vm3, %v147_v29 }
  0xf0   :  { %410 = vmatprep.mubr.msk.f32.mxu1 %vm479_vm1, %v478_v2 }
  0xf3   :  { %411 = vmatmul.mubr.msk.f32.gmra.mrb[2].mxu1 %vm168_vm3, %v148_v30 }
  0xf4   :  { %413 = vmatprep.mubr.msk.f32.mxu1 %vm479_vm1, %v478_v2 }
  0xf7   :  { %414 = vmatmul.mubr.msk.f32.gmra.mrb[4].mxu1 %vm168_vm3, %v149_v31 }
 0x1c2   :  { %v247_v32 = vpop.f32.mrb[0].mxu1 }
 0x1c3   :  { %v409_v34 = vpop.f32.mrb[1].mxu1  ;;  %v248_v35 = vadd.f32 %v247_v32, %v156_v33 }
 0x1c5   :  { %444 = vtanh.f32 %v248_v35 }
 0x1c6   :  { %v252_v37 = vpop.f32.mrb[2].mxu1 }
 0x1c7   :  { %v253_v38 = vadd.f32 %v252_v37, %v161_v36  ;;  %v412_v39 = vpop.f32.mrb[3].mxu1 }
 0x1c9   :  { %446 = vtanh.f32 %v253_v38 }
 0x1ca   :  { %v257_v41 = vpop.f32.mrb[4].mxu1 }
 0x1cb   :  { %v258_v42 = vadd.f32 %v257_v41, %v166_v40  ;;  %v415_v43 = vpop.f32.mrb[5].mxu1 }
 0x1cd   :  { %448 = vtanh.f32 %v258_v42 }
 0x1cf   :  { %v445_v44 = vpop.eup %444 }
 0x1d3   :  { %v447_v45 = vpop.eup %446 }
 0x1d4   :  { %v429_v46 = vpack.c.bf16 %v447_v45, %v445_v44 }
 0x1d6   :  { %430 = vmatpush3.bf16.msra.mxu0 %v429_v46 }
 0x1d7   :  { %420 = vmatprep.subr.mxu0 %v478_v2  ;;  %v449_v48 = vpop.eup %448 }
 0x1da   :  { %421 = vmatpush3.msk.msra.mxu0 %vm60_vm0, %v449_v48 }
 0x1db   :  { %423 = vmatmul.mubr.msk.f32.vlgmr.msra.gmra.mrb[6].mxu0 %vm168_vm3, %v264_v47 }
 0x2ae   :  { %v339_v50 = vpop.f32.mrb[6].mxu0 }
 0x2af   :  { %v340_v51 = vadd.f32 %v339_v50, %v266_v49  ;;  %v424_v52 = vpop.f32.mrb[7].mxu0 }
 0x2b1   :  { %v375_v53 = vmul.f32 -1.442695, %v340_v51 }
 0x2b3   :  { %450 = vpow2.f32 %v375_v53 }
 0x2bd   :  { %v451_v54 = vpop.eup %450 }
 0x2be   :  { %v346_v55 = vadd.f32 1.0, %v451_v54 }
 0x2c0   :  { %452 = vrcp.f32 %v346_v55 }
 0x2ca   :  { %v453_v56 = vpop.eup %452 }
 0x2cb   :  { %350 = vst.msk [vmem:[#allocation3] sm:$0x1] %vm349_vm4, %v453_v56 }
 0x2cc   :  { %465 = shalt.err (!%p462_p4)
}
 0x2cd   :  { %s466_s0 = scalar_lea.hbm %s614_s7, 16 }
 0x2ce   :  { %p467_p5 = scmp.ne.s32.totalorder %s614_s7, %s466_s0  ;;  %p470_p6 = scmp.lt.u32.totalorder %s466_s0, %s614_s7 }
 0x2d0   :  { %p472_p7 = pnand %p470_p6, %p467_p5 }
 0x2d2   :  { %475 = shalt.err (!%p472_p7)
}
 0x2d3   :  { %360 = dma.vmem_to_hbm [thread:$0]  %s358_s27, 16, %s614_s7, [#allocation4]  }
 0x2d4   :  { %476 = dma.done.wait [#allocation4], 16  }
 0x2d5   :  { %477 = vsyncadd [#allocation4], 4294967280 }
 0x2d6   :  { %364 = vsyncpa [#allocation4], 1 }

</bundles_post_ra>
